<compile_context>
chip_gen: v6e
topology: v6e:2x2x1
jax: 0.10.0
libtpu: 0.0.40
codegen_flags: <defaults>
</compile_context>

<pallas_src>
import jax
import jax.numpy as jnp
from jax.experimental import pallas as pl
from jax.experimental.pallas import tpu as pltpu


def _round_down(x: int, m: int) -> int:
    return (x // m) * m


def fold_affine_into_layer1(w1_torch, b1):
    """Fold the z*2-1 input affine into layer-1 params (torch layout).

    torch forward:  h = (2z - 1) @ W1.T + b1,   W1: (H, L), b1: (H,)
    folded:         h = z @ (2*W1).T + (b1 - W1.sum(axis=1))
    """
    return 2.0 * w1_torch, b1 - jnp.sum(w1_torch, axis=1)


def pack_layer_vectors(b1_folded, w2):
    """Pack folded layer-1 bias and the layer-2 weight row into one (H, 2)
    column pair: column 0 = b1', column 1 = w2."""
    return jnp.stack([b1_folded, w2.reshape(-1)], axis=1)


def qfunc_kernel(zt_ref, w1_ref, bw_ref, b2_ref, o_ref):
    # zt_ref: (L, tb)  -- batch on lanes.      w1_ref: (H, L) torch layout.
    # bw_ref: (H, 2)   -- col 0 = b1', col 1 = w2.   b2_ref: (1,) scalar in SMEM.
    # o_ref : (1, tb)  -- lane-dense output row.
    # Layer 1 on the MXU (f32 accumulate); bias add (VPU) + tanh (EUP) run with
    # only H sublanes live instead of 128 padded lanes.
    h = jnp.dot(w1_ref[...], zt_ref[...], preferred_element_type=jnp.float32)  # (H, tb)
    h = jnp.tanh(h + bw_ref[:, 0:1])
    # Layer 2 (out_features == 1): scale rows by w2 and reduce over the H
    # sublanes (XLU), producing a lane-dense (1, tb) row; b2 read from SMEM.
    o_ref[...] = jnp.sum(h * bw_ref[:, 1:2], axis=0, keepdims=True) + b2_ref[0]


def qfunc_forward_transposed(zt, w1f, bw, b2, *, block_batch=65536):
    """Kernel entry point on the transposed layout.

    zt : (L, B) f32 (batch on lanes)   w1f: (H, L) f32 (folded, torch layout)
    bw : (H, 2) f32 ([b1', w2])        b2 : (1,) f32
    returns (1, B) f32
    """
    L, B = zt.shape
    H = w1f.shape[0]

    if B <= 128:
        tb = B                                   # full-dim block (no 128 requirement)
    else:
        # 128-lane-aligned tile, capped so zt/out double buffers + the (H, tb)
        # intermediate stay well inside the 32 MiB default scoped VMEM
        # (~256 B / row) on all of v5e / v6e / v7x.
        tb = max(128, min(block_batch, _round_down(B, 128)))
        # v7x: prefer >=2 grid steps so ("parallel",) can shard the batch over
        # both TensorCores, but only once per-step DMA isn't dwarfed by the
        # ~0.35 us fixed per-step overhead.
        if pl.cdiv(B, tb) < 2 and B >= 8192:
            tb = max(128, _round_down(B // 2, 128))
    grid = (pl.cdiv(B, tb),)

    cost = pl.CostEstimate(
        flops=2 * B * L * H + 3 * B * H,
        transcendentals=B * H,
        bytes_accessed=B * L * 4 + B * 4 + (H * L + 2 * H + 1) * 4,
    )

    return pl.pallas_call(
        qfunc_kernel,
        out_shape=jax.ShapeDtypeStruct((1, B), jnp.float32),
        grid=grid,
        in_specs=[
            pl.BlockSpec((L, tb), lambda i: (0, i)),            # zT: tiled over batch (lanes)
            pl.BlockSpec((H, L), lambda i: (0, 0)),             # W1': resident, DMA'd once
            pl.BlockSpec((H, 2), lambda i: (0, 0)),             # [b1', w2]: resident
            pl.BlockSpec(memory_space=pltpu.MemorySpace.SMEM),  # b2: scalar in SMEM
        ],
        out_specs=pl.BlockSpec((1, tb), lambda i: (0, i)),
        compiler_params=pltpu.CompilerParams(
            dimension_semantics=("parallel",),                  # v7x: 2 TCs split the batch
        ),
        cost_estimate=cost,
    )(zt, w1f, bw, b2)


def qfunc_forward(z, w1f, bw, b2, *, block_batch=65536):
    """Torch-layout entry point: z (B, L) -> (B, 1).

    The transpose here is the "producer-side" relayout from the review; an
    upstream producer should ideally emit (L, B) and call
    qfunc_forward_transposed directly.
    """
    out_row = qfunc_forward_transposed(z.T, w1f, bw, b2, block_batch=block_batch)
    return out_row.reshape(-1, 1)


def qfunc_reference(z, w1_torch, b1, w2, b2):
    """Pure-JAX reference with *unfolded* torch-layout parameters."""
    h = jnp.tanh((z * 2.0 - 1.0) @ w1_torch.T + b1)
    return h @ w2.T + b2


if __name__ == "__main__":
    # Shapes implied by the module: QFunc(num_latents=16, hidden_size=10).
    batch, num_latents, hidden_size = 8, 16, 10

    key = jax.random.PRNGKey(0)
    k_z, k_w1, k_b1, k_w2, k_b2 = jax.random.split(key, 5)

    z = jax.random.uniform(k_z, (batch, num_latents), dtype=jnp.float32)

    # Deterministic torch-Linear-style init (uniform +/- 1/sqrt(fan_in)),
    # parameters kept in torch layout.
    bound1 = num_latents ** -0.5
    w1_torch = jax.random.uniform(k_w1, (hidden_size, num_latents), jnp.float32,
                                  minval=-bound1, maxval=bound1)
    b1 = jax.random.uniform(k_b1, (hidden_size,), jnp.float32,
                            minval=-bound1, maxval=bound1)
    bound2 = hidden_size ** -0.5
    w2 = jax.random.uniform(k_w2, (1, hidden_size), jnp.float32,
                            minval=-bound2, maxval=bound2)
    b2 = jax.random.uniform(k_b2, (1,), jnp.float32,
                            minval=-bound2, maxval=bound2)

    # One-time parameter prep: fold the z*2-1 affine, pack [b1', w2].
    w1f, b1f = fold_affine_into_layer1(w1_torch, b1)
    bw = pack_layer_vectors(b1f, w2)

    # Check 1: tiny batch (single full-dim block).
    out = jax.block_until_ready(qfunc_forward(z, w1f, bw, b2))
    ref = qfunc_reference(z, w1_torch, b1, w2, b2)
    assert out.shape == (batch, 1), out.shape
    assert jnp.allclose(out, ref, atol=1e-5, rtol=1e-5), "mismatch vs reference"

    # Check 2: exercise the batch grid with a partial last block
    # (B=300, tb=128 -> 3 grid steps, last block masked by Pallas).
    batch2 = 300
    z2 = jax.random.uniform(jax.random.PRNGKey(1), (batch2, num_latents),
                            dtype=jnp.float32)
    out2 = jax.block_until_ready(qfunc_forward(z2, w1f, bw, b2, block_batch=128))
    ref2 = qfunc_reference(z2, w1_torch, b1, w2, b2)
    assert out2.shape == (batch2, 1), out2.shape
    assert jnp.allclose(out2, ref2, atol=1e-5, rtol=1e-5), "mismatch vs reference (tiled)"

    print("KERNEL_OK")
</pallas_src>

<mosaic_0001>
module attributes {stable_mosaic.version = 11 : i64} {
  func.func @qfunc_kernel(%arg0: i32, %arg1: memref<16x8xf32, #tpu.memory_space<vmem>>, %arg2: memref<10x16xf32, #tpu.memory_space<vmem>>, %arg3: memref<10x2xf32, #tpu.memory_space<vmem>>, %arg4: memref<1xf32, #tpu.memory_space<smem>>, %arg5: memref<1x8xf32, #tpu.memory_space<vmem>>) attributes {dimension_semantics = [#tpu.dimension_semantics<parallel>], iteration_bounds = array<i64: 1>, scalar_prefetch = 0 : i64, scratch_operands = 0 : i64, tpu.core_type = #tpu.core_type<tc>, window_params = [{transform_indices = @transform_0, window_bounds = array<i64: 16, 8>}, {pipeline_mode = #tpu.pipeline_mode<synchronous>, transform_indices = @transform_1, window_bounds = array<i64: 10, 16>}, {pipeline_mode = #tpu.pipeline_mode<synchronous>, transform_indices = @transform_2, window_bounds = array<i64: 10, 2>}, {transform_indices = @transform_3, window_bounds = array<i64: 1>}, {transform_indices = @transform_4, window_bounds = array<i64: 1, 8>}]} {
    %c0 = arith.constant 0 : index
    %c0_0 = arith.constant 0 : index
    %0 = vector.load %arg2[%c0, %c0_0] : memref<10x16xf32, #tpu.memory_space<vmem>>, vector<10x16xf32>
    %c0_1 = arith.constant 0 : index
    %c0_2 = arith.constant 0 : index
    %1 = vector.load %arg1[%c0_1, %c0_2] : memref<16x8xf32, #tpu.memory_space<vmem>>, vector<16x8xf32>
    %cst = arith.constant dense<0.000000e+00> : vector<10x8xf32>
    %2 = tpu.matmul %0, %1, %cst {dimension_numbers = #tpu.dot_dimension_numbers<[1], [0], [0], [1], [0, 0, 1, 1], [], []>} : vector<10x16xf32>, vector<16x8xf32>, vector<10x8xf32> -> vector<10x8xf32>
    %c0_3 = arith.constant 0 : index
    %c0_4 = arith.constant 0 : index
    %3 = vector.load %arg3[%c0_3, %c0_4] : memref<10x2xf32, #tpu.memory_space<vmem>>, vector<10x1xf32>
    %4 = vector.broadcast %3 : vector<10x1xf32> to vector<10x8xf32>
    %5 = arith.addf %2, %4 : vector<10x8xf32>
    %6 = math.tanh %5 : vector<10x8xf32>
    %c0_5 = arith.constant 0 : index
    %c1 = arith.constant 1 : index
    %7 = vector.load %arg3[%c0_5, %c1] : memref<10x2xf32, #tpu.memory_space<vmem>>, vector<10x1xf32>
    %8 = vector.broadcast %7 : vector<10x1xf32> to vector<10x8xf32>
    %9 = arith.mulf %6, %8 : vector<10x8xf32>
    %cst_6 = arith.constant dense<0.000000e+00> : vector<8xf32>
    %10 = vector.multi_reduction <add>, %9, %cst_6 [0] : vector<10x8xf32> to vector<8xf32>
    %11 = vector.shape_cast %10 : vector<8xf32> to vector<1x8xf32>
    %c0_7 = arith.constant 0 : index
    %12 = memref.load %arg4[%c0_7] : memref<1xf32, #tpu.memory_space<smem>>
    %13 = vector.broadcast %12 : f32 to vector<1x8xf32>
    %14 = arith.addf %11, %13 : vector<1x8xf32>
    %c0_8 = arith.constant 0 : index
    %c0_9 = arith.constant 0 : index
    %15 = vector.load %arg5[%c0_8, %c0_9] : memref<1x8xf32, #tpu.memory_space<vmem>>, vector<1x8xf32>
    tpu.vector_store %arg5[%c0_8, %c0_9], %14 {strides = array<i32>} : memref<1x8xf32, #tpu.memory_space<vmem>>, vector<1x8xf32>,
    return
  }
  func.func @transform_0(%arg0: i32) -> (i32, i32) {
    %c0_i32 = arith.constant 0 : i32
    %c0_i32_0 = arith.constant 0 : i32
    return %c0_i32, %arg0 : i32, i32
  }
  func.func @transform_1(%arg0: i32) -> (i32, i32) {
    %c0_i32 = arith.constant 0 : i32
    %c0_i32_0 = arith.constant 0 : i32
    %c0_i32_1 = arith.constant 0 : i32
    return %c0_i32, %c0_i32_0 : i32, i32
  }
  func.func @transform_2(%arg0: i32) -> (i32, i32) {
    %c0_i32 = arith.constant 0 : i32
    %c0_i32_0 = arith.constant 0 : i32
    %c0_i32_1 = arith.constant 0 : i32
    return %c0_i32, %c0_i32_0 : i32, i32
  }
  func.func @transform_3(%arg0: i32) -> i32 {
    %c0_i32 = arith.constant 0 : i32
    %c0_i32_0 = arith.constant 0 : i32
    return %c0_i32 : i32
  }
  func.func @transform_4(%arg0: i32) -> (i32, i32) {
    %c0_i32 = arith.constant 0 : i32
    %c0_i32_0 = arith.constant 0 : i32
    return %c0_i32, %arg0 : i32, i32
  }
}

</mosaic_0001>

<bundles_post_ra>
// kernel: tpu_custom_call.1
= control target key start
LH: loop header
LB: loop body
LE: loop exit
PB: predicated region body
PF: predicated region fallthrough
CT: control target
= control target key end

     0   :  { %vm35_vm0 = vcmask 130048   ;;  %v204_v5 = vmov 0   ;;  %s256_s0 = inlined_call_operand.vmem [shape: f32[16,8], index: 0, kind: input, shape index: {}]   ;;  %s257_s1 = inlined_call_operand.vmem [shape: f32[10,16], index: 1, kind: input, shape index: {}]   ;;  %s258_s2 = inlined_call_operand.vmem [shape: f32[10,2], index: 2, kind: input, shape index: {}]   ;;  %s259_s3 = inlined_call_operand.<no memory space> [shape: f32[1], index: 3, kind: input, shape index: {}]   ;;  %s260_s4 = inlined_call_operand.hbm [shape: f32[1,8], index: 4, kind: output, shape index: {}]  }
   0x1   :  { %v22_v0 = vld [vmem:[%s256_s0 + $0x8] sm:$0xff]  ;;  %v21_v1 = vld [vmem:[%s256_s0] sm:$0xff]  ;;  %175 = vset.pattern.permute.xlu0 %v204_v5 }
   0x2   :  { %v19_v2 = vld [vmem:[%s257_s1] sm:$0xff]  ;;  %165 = vmatprep.subr.mxu0 %v22_v0  ;;  %v20_v4 = vld [vmem:[%s257_s1 + $0x8] sm:$0x3] }
   0x3   :  { %169 = vmatprep.mubr.msk.f32.mxu0 %vm35_vm0, %v19_v2  ;;  %v23_v3 = vld [vmem:[%s258_s2] sm:$0xff]  ;;  %166 = vmatpush3.msra.mxu0 %v22_v0 }
   0x4   :  { %10 = vsyncpa [#allocation4], 0  ;;  %167 = vmatprep.subr.mxu0 %v21_v1  ;;  %27 = vperm.xlu0 %175, %v23_v3   ;;  %v24_v6 = vld [vmem:[%s258_s2 + $0x8] sm:$0x3]  ;;  %v205_v7 = vmov 1   ;;  %vm129_vm1 = vcmask 64512   ;;  %v141_v28 = vstv %s259_s3 }
   0x5   :  { %168 = vmatpush3.msra.mxu0 %v21_v1  ;;  %176 = vset.pattern.permute.xlu1 %v205_v7  ;;  %vm131_vm2 = vcmask 58368   ;;  %s206_s26 = smov [#allocation3]   ;;  %vm143_vm3 = vcmask 57344  }
   0x6   :  { %170 = vmatmul.mubr.msk.f32.vlgmr.msra.gmra.mxu0 %vm35_vm0, %v20_v4  ;;  %120 = vperm.xlu1 %176, %v23_v3   ;;  %s151_s27 = sshll.u32 %s206_s26, 4  ;;  %s152_s27 = int_to_ptr.vmem [resolvable:$true] %s151_s27 }
   0x7   :  { %s182_s28 = scalar_lea.vmem %s152_s27, 16  ;;  %s186_s29 = scalar_lea.vmem %s152_s27, 32 }
   0x8   :  { %32 = vperm.xlu0 %175, %v24_v6   ;;  %p183_p0 = scmp.ne.s32.totalorder %s152_s27, %s182_s28  ;;  %p187_p1 = scmp.lt.s32.totalorder %s152_s27, %s152_s27 }
   0x9   :  { %p188_p2 = scmp.lt.s32.totalorder %s186_s29, %s182_s28 }
   0xa   :  { %124 = vperm.xlu1 %176, %v24_v6  }
   0xb   :  { %p189_p3 = por %p188_p2, %p187_p1 }
   0xc   :  { %177 = vset.pattern.permute.xlu0 %v205_v7 }
   0xd   :  { %p190_p4 = pnand %p189_p3, %p183_p0 }
  0x7f   :  { %v28_v8 = vpop.permute.xlu0 %27 }
  0x81   :  { %v121_v14 = vpop.permute.xlu1 %120 }
  0x83   :  { %v33_v9 = vpop.permute.xlu0 %32 }
  0x85   :  { %v125_v16 = vpop.permute.xlu1 %124 }
  0xc6   :  { %v171_v10 = vpop.f32.mrf.mxu0 }
  0xc7   :  { %v114_v11 = vadd.f32 %v171_v10, %v33_v9 }
  0xc8   :  { %v108_v12 = vpop.f32.mrf.mxu0 }
  0xc9   :  { %178 = vtanh.f32 %v114_v11  ;;  %v109_v13 = vadd.f32 %v108_v12, %v28_v8 }
  0xcb   :  { %180 = vtanh.f32 %v109_v13 }
  0xd6   :  { %v179_v15 = vpop.eup %178 }
  0xd7   :  { %v128_v17 = vmul.f32 %v179_v15, %v125_v16 }
  0xd8   :  { %v181_v18 = vpop.eup %180 }
  0xd9   :  { %v127_v19 = vmul.f32 %v181_v18, %v121_v14  ;;  %v132_v21 = vsel %vm131_vm2, %v128_v17, 0.0 }
  0xdb   :  { %v130_v20 = vsel %vm129_vm1, %v127_v19, 0.0 }
  0xdc   :  { %v133_v22 = vadd.f32 %v132_v21, %v130_v20 }
  0xde   :  { %v134_v23 = vrot.slane %v133_v22, 4 }
  0xe0   :  { %v135_v24 = vadd.f32 %v134_v23, %v133_v22 }
  0xe2   :  { %v136_v25 = vrot.slane %v135_v24, 2 }
  0xe4   :  { %v137_v26 = vadd.f32 %v136_v25, %v135_v24 }
  0xe6   :  { %v138_v27 = vrot.slane %v137_v26, 1 }
  0xe8   :  { %v139_v29 = vadd.f32 %v138_v27, %v137_v26 }
  0xea   :  { %v142_v30 = vadd.f32 %v141_v28, %v139_v29 }
  0xec   :  { %144 = vst.msk [vmem:[#allocation3] sm:$0x1] %vm143_vm3, %v142_v30 }
  0xed   :  { %193 = shalt.err (!%p190_p4)
}
  0xee   :  { %154 = dma.vmem_to_hbm [thread:$0]  %s152_s27, 16, %s260_s4, [#allocation4]  }
  0xef   :  { %202 = dma.done.wait [#allocation4], 16  }
  0xf0   :  { %203 = vsyncadd [#allocation4], 4294967280 }
  0xf1   :  { %158 = vsyncpa [#allocation4], 1 }

</bundles_post_ra>
